<compile_context>
chip_gen: v7x
topology: tpu7x:2x2x1
jax: 0.10.0
libtpu: 0.0.40
codegen_flags: <defaults>
</compile_context>

<pallas_src>
import functools

import jax
import jax.numpy as jnp
from jax.experimental import pallas as pl
from jax.experimental.pallas import tpu as pltpu


def _circular_taps_flat(a, H, W, K):
    """Return the K*K circularly shifted copies of a (C, H*W) channels-first tile.

    Tap order is (kh, kw) row-major with channels innermost, matching the weight
    layout (Cout, K*K*C) prepared in the wrapper.

    The H-shift of a flattened (C, H*W) tile is a plain roll by shift*W (whole rows).
    The per-row circular W-shift is two static rolls combined with a lane-position
    select (w < t picks the row-wrapped copy).
    """
    p = K // 2
    C, HW = a.shape
    # w-coordinate of every flattened spatial position (2-D iota is TPU-legal).
    col = jax.lax.broadcasted_iota(jnp.int32, (C, HW), 1) % W

    taps = []
    for kh in range(K):
        s_h = ((p - kh) % H) * W                  # H-roll expressed on the flat axis
        a_h = jnp.roll(a, s_h, axis=1) if s_h else a
        for kw in range(K):
            t = (p - kw) % W                      # in-row circular W-shift
            if t == 0:
                taps.append(a_h)
            else:
                hi = jnp.roll(a_h, t, axis=1)     # correct for lanes with w >= t
                lo = jnp.roll(a_h, t - W, axis=1) # correct for lanes with w <  t
                taps.append(jnp.where(col < t, lo, hi))
    return taps


def make_basic_block_kernel(*, H, W, K, Cin, Cout, apply_bn1, compute_dtype):
    HW = H * W
    ch1 = (Cout - Cin) // 2
    ch2 = Cout - Cin - ch1

    def kernel(*refs):
        if apply_bn1:
            x_ref, s1_ref, b1_ref, w1_ref, s2_ref, b2_ref, w2_ref, o_ref = refs
        else:
            x_ref, w1_ref, s2_ref, b2_ref, w2_ref, o_ref = refs

        x = x_ref[...].astype(jnp.float32)                     # (Cin, H*W)

        # ---- stage 1: [BN1 + ReLU1 + Dropout1(id)] -> conv1 (circular) ----
        a = x
        if apply_bn1:
            # folded BN (eval): per-channel scale/bias, (Cin, 1) broadcast over lanes
            a = jnp.maximum(a * s1_ref[...] + b1_ref[...], 0.0)
        a = a.astype(compute_dtype)
        patches1 = jnp.concatenate(_circular_taps_flat(a, H, W, K), axis=0)
        # single MXU contraction: (Cout, K*K*Cin) @ (K*K*Cin, H*W) -> f32 (Cout, H*W)
        out1 = jnp.dot(w1_ref[...], patches1, preferred_element_type=jnp.float32)

        # ---- stage 2: BN2 + ReLU2 + Dropout2(id) -> conv2 (circular) ----
        b = jnp.maximum(out1 * s2_ref[...] + b2_ref[...], 0.0)  # f32 elementwise
        b = b.astype(compute_dtype)
        patches2 = jnp.concatenate(_circular_taps_flat(b, H, W, K), axis=0)
        out2 = jnp.dot(w2_ref[...], patches2, preferred_element_type=jnp.float32)

        # ---- residual: identity (= raw x) zero-padded along channels ----
        if Cout == Cin:
            out2 = out2 + x
        else:
            pieces = []
            if ch1:
                pieces.append(jnp.zeros((ch1, HW), jnp.float32))
            pieces.append(x)
            if ch2:
                pieces.append(jnp.zeros((ch2, HW), jnp.float32))
            out2 = out2 + jnp.concatenate(pieces, axis=0)

        o_ref[...] = out2.astype(o_ref.dtype)                  # lane-dense (Cout, H*W)

    return kernel


def basic_block_forward(x_nchw, params, *, kernel_size, is_first_block=False,
                        compute_dtype=jnp.bfloat16):
    """Pallas-backed BasicBlock.forward. Input/output are NCHW (PyTorch convention)."""
    K = kernel_size
    eps = 1e-5
    x = x_nchw.astype(jnp.float32)
    N, Cin, H, W = x.shape
    Cout = params["conv1_w"].shape[0]
    HW = H * W
    apply_bn1 = not is_first_block

    # Fold BatchNorm (eval mode, running stats) into per-channel scale/bias.
    s2 = params["bn2_gamma"] * jax.lax.rsqrt(params["bn2_var"] + eps)
    b2 = params["bn2_beta"] - params["bn2_mean"] * s2

    # Conv weights (PyTorch OIHW) -> (Cout, K*K*Cin), tap-major / channel-innermost,
    # matching the in-kernel im2col row order; pre-cast to the MXU operand dtype.
    def prep_w(w_oihw):
        co = w_oihw.shape[0]
        return (jnp.transpose(w_oihw, (0, 2, 3, 1))
                .reshape(co, -1).astype(compute_dtype))

    w1 = prep_w(params["conv1_w"])
    w2 = prep_w(params["conv2_w"])

    # NCHW -> (N, C, H*W): a free, contiguous reshape (no transpose, no HBM shuffle).
    x_flat = x.reshape(N, Cin, HW)

    inputs = [x_flat]
    in_specs = [pl.BlockSpec((None, Cin, HW), lambda n: (n, 0, 0))]
    if apply_bn1:
        s1 = params["bn1_gamma"] * jax.lax.rsqrt(params["bn1_var"] + eps)
        b1 = params["bn1_beta"] - params["bn1_mean"] * s1
        inputs += [s1.reshape(Cin, 1), b1.reshape(Cin, 1)]
        in_specs += [pl.BlockSpec((Cin, 1), lambda n: (0, 0)),
                     pl.BlockSpec((Cin, 1), lambda n: (0, 0))]
    inputs += [w1, s2.reshape(Cout, 1), b2.reshape(Cout, 1), w2]
    in_specs += [pl.BlockSpec(w1.shape, lambda n: (0, 0)),
                 pl.BlockSpec((Cout, 1), lambda n: (0, 0)),
                 pl.BlockSpec((Cout, 1), lambda n: (0, 0)),
                 pl.BlockSpec(w2.shape, lambda n: (0, 0))]

    kernel = make_basic_block_kernel(H=H, W=W, K=K, Cin=Cin, Cout=Cout,
                                     apply_bn1=apply_bn1,
                                     compute_dtype=compute_dtype)

    flops = 2 * N * HW * K * K * (Cin * Cout + Cout * Cout)
    bytes_accessed = (x_flat.size * 4 + w1.size * 2 + w2.size * 2
                      + N * Cout * HW * 4 + 4 * 4 * (Cin + Cout))

    out_flat = pl.pallas_call(
        kernel,
        out_shape=jax.ShapeDtypeStruct((N, Cout, HW), jnp.float32),
        grid=(N,),
        in_specs=in_specs,
        out_specs=pl.BlockSpec((None, Cout, HW), lambda n: (n, 0, 0)),
        compiler_params=pltpu.CompilerParams(
            dimension_semantics=("parallel",),
            vmem_limit_bytes=32 * 1024 * 1024),
        cost_estimate=pl.CostEstimate(flops=flops, transcendentals=0,
                                      bytes_accessed=bytes_accessed),
    )(*inputs)

    return out_flat.reshape(N, Cout, H, W)


# ----------------------------- reference (pure JAX) -----------------------------

def reference_forward(x_nchw, params, *, kernel_size, is_first_block=False):
    """Independent NCHW reference mirroring the PyTorch module (eval mode)."""
    K = kernel_size
    p = K // 2
    eps = 1e-5

    def circ_conv(x, w_oihw):
        xp = jnp.pad(x, ((0, 0), (0, 0), (p, p), (p, p)), mode="wrap")
        return jax.lax.conv_general_dilated(
            xp, w_oihw, (1, 1), "VALID",
            dimension_numbers=("NCHW", "OIHW", "NCHW"))

    def bn(x, gamma, beta, mean, var):
        s = gamma * jax.lax.rsqrt(var + eps)
        b = beta - mean * s
        return x * s[None, :, None, None] + b[None, :, None, None]

    out = x_nchw
    if not is_first_block:
        out = jnp.maximum(
            bn(out, params["bn1_gamma"], params["bn1_beta"],
               params["bn1_mean"], params["bn1_var"]), 0.0)
    out = circ_conv(out, params["conv1_w"])
    out = jnp.maximum(
        bn(out, params["bn2_gamma"], params["bn2_beta"],
           params["bn2_mean"], params["bn2_var"]), 0.0)
    out = circ_conv(out, params["conv2_w"])

    Cin = x_nchw.shape[1]
    Cout = out.shape[1]
    identity = x_nchw
    if Cout != Cin:
        ch1 = (Cout - Cin) // 2
        ch2 = Cout - Cin - ch1
        identity = jnp.pad(x_nchw, ((0, 0), (ch1, ch2), (0, 0), (0, 0)))
    return out + identity


# ----------------------------------- main -----------------------------------

if __name__ == "__main__":
    N, Cin, Cout, H, W, K = 2, 4, 8, 16, 16, 3
    is_first_block = False

    key = jax.random.PRNGKey(0)
    keys = jax.random.split(key, 8)

    x = jax.random.normal(keys[0], (N, Cin, H, W), dtype=jnp.float32)

    params = {
        # PyTorch-native OIHW conv weights (bias=False).
        "conv1_w": 0.1 * jax.random.normal(keys[1], (Cout, Cin, K, K), jnp.float32),
        "conv2_w": 0.1 * jax.random.normal(keys[2], (Cout, Cout, K, K), jnp.float32),
        "bn1_gamma": 1.0 + 0.1 * jax.random.normal(keys[3], (Cin,), jnp.float32),
        "bn1_beta": 0.1 * jax.random.normal(keys[4], (Cin,), jnp.float32),
        "bn1_mean": 0.05 * jax.random.normal(keys[5], (Cin,), jnp.float32),
        "bn1_var": jnp.abs(jax.random.normal(keys[6], (Cin,), jnp.float32)) + 0.5,
        "bn2_gamma": 1.0 + 0.1 * jax.random.normal(keys[7], (Cout,), jnp.float32),
        "bn2_beta": jnp.zeros((Cout,), jnp.float32),
        "bn2_mean": jnp.zeros((Cout,), jnp.float32),
        "bn2_var": jnp.ones((Cout,), jnp.float32),
    }

    ref = reference_forward(x, params, kernel_size=K, is_first_block=is_first_block)

    # Exact-math path (f32 MXU operands) — tight tolerance.
    fwd_f32 = jax.jit(functools.partial(
        basic_block_forward, kernel_size=K, is_first_block=is_first_block,
        compute_dtype=jnp.float32))
    out_f32 = jax.block_until_ready(fwd_f32(x, params))
    assert out_f32.shape == (N, Cout, H, W), out_f32.shape
    assert jnp.allclose(out_f32, ref, atol=1e-3, rtol=1e-3), \
        float(jnp.max(jnp.abs(out_f32 - ref)))

    # Optimized path: bf16 MXU operands, f32 accumulation (v6e/v7x recipe).
    fwd_bf16 = jax.jit(functools.partial(
        basic_block_forward, kernel_size=K, is_first_block=is_first_block,
        compute_dtype=jnp.bfloat16))
    out_bf16 = jax.block_until_ready(fwd_bf16(x, params))
    assert out_bf16.shape == (N, Cout, H, W), out_bf16.shape
    assert jnp.allclose(out_bf16, ref, atol=5e-2, rtol=5e-2), \
        float(jnp.max(jnp.abs(out_bf16 - ref)))

    print("KERNEL_OK")
</pallas_src>

<mosaic_0001>
module attributes {stable_mosaic.version = 11 : i64} {
  func.func @kernel(%arg0: i32, %arg1: memref<1x4x256xf32, #tpu.memory_space<vmem>>, %arg2: memref<4x1xf32, #tpu.memory_space<vmem>>, %arg3: memref<4x1xf32, #tpu.memory_space<vmem>>, %arg4: memref<8x36xf32, #tpu.memory_space<vmem>>, %arg5: memref<8x1xf32, #tpu.memory_space<vmem>>, %arg6: memref<8x1xf32, #tpu.memory_space<vmem>>, %arg7: memref<8x72xf32, #tpu.memory_space<vmem>>, %arg8: memref<1x8x256xf32, #tpu.memory_space<vmem>>) attributes {dimension_semantics = [#tpu.dimension_semantics<parallel>], iteration_bounds = array<i64: 2>, scalar_prefetch = 0 : i64, scratch_operands = 0 : i64, tpu.core_type = #tpu.core_type<tc>, window_params = [{transform_indices = @transform_0, window_bounds = array<i64: 1, 4, 256>}, {pipeline_mode = #tpu.pipeline_mode<synchronous>, transform_indices = @transform_1, window_bounds = array<i64: 4, 1>}, {pipeline_mode = #tpu.pipeline_mode<synchronous>, transform_indices = @transform_2, window_bounds = array<i64: 4, 1>}, {pipeline_mode = #tpu.pipeline_mode<synchronous>, transform_indices = @transform_3, window_bounds = array<i64: 8, 36>}, {pipeline_mode = #tpu.pipeline_mode<synchronous>, transform_indices = @transform_4, window_bounds = array<i64: 8, 1>}, {pipeline_mode = #tpu.pipeline_mode<synchronous>, transform_indices = @transform_5, window_bounds = array<i64: 8, 1>}, {pipeline_mode = #tpu.pipeline_mode<synchronous>, transform_indices = @transform_6, window_bounds = array<i64: 8, 72>}, {transform_indices = @transform_7, window_bounds = array<i64: 1, 8, 256>}]} {
    %c0 = arith.constant 0 : index
    %c0_0 = arith.constant 0 : index
    %c0_1 = arith.constant 0 : index
    %0 = vector.load %arg1[%c0, %c0_0, %c0_1] : memref<1x4x256xf32, #tpu.memory_space<vmem>>, vector<1x4x256xf32>
    %1 = vector.shape_cast %0 : vector<1x4x256xf32> to vector<4x256xf32>
    %c0_2 = arith.constant 0 : index
    %c0_3 = arith.constant 0 : index
    %2 = vector.load %arg2[%c0_2, %c0_3] : memref<4x1xf32, #tpu.memory_space<vmem>>, vector<4x1xf32>
    %3 = vector.broadcast %2 : vector<4x1xf32> to vector<4x256xf32>
    %4 = arith.mulf %1, %3 : vector<4x256xf32>
    %c0_4 = arith.constant 0 : index
    %c0_5 = arith.constant 0 : index
    %5 = vector.load %arg3[%c0_4, %c0_5] : memref<4x1xf32, #tpu.memory_space<vmem>>, vector<4x1xf32>
    %6 = vector.broadcast %5 : vector<4x1xf32> to vector<4x256xf32>
    %7 = arith.addf %4, %6 : vector<4x256xf32>
    %cst = arith.constant 0.000000e+00 : f32
    %8 = vector.broadcast %cst : f32 to vector<4x256xf32>
    %9 = arith.maximumf %7, %8 : vector<4x256xf32>
    %10 = tpu.iota {dimensions = array<i32: 1>} : vector<4x256xi32>
    %c16_i32 = arith.constant 16 : i32
    %c0_i32 = arith.constant 0 : i32
    %11 = arith.cmpi eq, %c16_i32, %c0_i32 : i32
    %c1_i32 = arith.constant 1 : i32
    %12 = arith.select %11, %c1_i32, %c16_i32 : i32
    %13 = vector.broadcast %12 : i32 to vector<4x256xi32>
    %14 = arith.remsi %10, %13 : vector<4x256xi32>
    %c0_i32_6 = arith.constant 0 : i32
    %15 = vector.broadcast %c0_i32_6 : i32 to vector<4x256xi32>
    %16 = arith.cmpi ne, %14, %15 : vector<4x256xi32>
    %c0_i32_7 = arith.constant 0 : i32
    %17 = vector.broadcast %c0_i32_7 : i32 to vector<4x256xi32>
    %18 = arith.cmpi slt, %14, %17 : vector<4x256xi32>
    %c0_i32_8 = arith.constant 0 : i32
    %19 = arith.cmpi slt, %12, %c0_i32_8 : i32
    %20 = vector.broadcast %19 : i1 to vector<4x256xi1>
    %21 = vector.broadcast %20 : vector<4x256xi1> to vector<4x256xi1>
    %22 = arith.xori %18, %21 : vector<4x256xi1>
    %23 = arith.andi %22, %16 : vector<4x256xi1>
    %24 = vector.broadcast %12 : i32 to vector<4x256xi32>
    %25 = arith.addi %14, %24 : vector<4x256xi32>
    %26 = arith.select %23, %25, %14 : vector<4x256xi1>, vector<4x256xi32>
    %27 = vector.extract_strided_slice %9 {offsets = [0, 240], sizes = [4, 16], strides = [1, 1]} : vector<4x256xf32> to vector<4x16xf32>
    %28 = vector.extract_strided_slice %9 {offsets = [0, 0], sizes = [4, 240], strides = [1, 1]} : vector<4x256xf32> to vector<4x240xf32>
    %29 = tpu.concatenate %27, %28 in 1 : vector<4x16xf32>, vector<4x240xf32> -> vector<4x256xf32>
    %30 = vector.extract_strided_slice %29 {offsets = [0, 255], sizes = [4, 1], strides = [1, 1]} : vector<4x256xf32> to vector<4x1xf32>
    %31 = vector.extract_strided_slice %29 {offsets = [0, 0], sizes = [4, 255], strides = [1, 1]} : vector<4x256xf32> to vector<4x255xf32>
    %32 = tpu.concatenate %30, %31 in 1 : vector<4x1xf32>, vector<4x255xf32> -> vector<4x256xf32>
    %33 = vector.extract_strided_slice %29 {offsets = [0, 15], sizes = [4, 241], strides = [1, 1]} : vector<4x256xf32> to vector<4x241xf32>
    %34 = vector.extract_strided_slice %29 {offsets = [0, 0], sizes = [4, 15], strides = [1, 1]} : vector<4x256xf32> to vector<4x15xf32>
    %35 = tpu.concatenate %33, %34 in 1 : vector<4x241xf32>, vector<4x15xf32> -> vector<4x256xf32>
    %c1_i32_9 = arith.constant 1 : i32
    %36 = vector.broadcast %c1_i32_9 : i32 to vector<4x256xi32>
    %37 = arith.cmpi slt, %26, %36 : vector<4x256xi32>
    %38 = arith.select %37, %35, %32 : vector<4x256xi1>, vector<4x256xf32>
    %39 = vector.extract_strided_slice %29 {offsets = [0, 241], sizes = [4, 15], strides = [1, 1]} : vector<4x256xf32> to vector<4x15xf32>
    %40 = vector.extract_strided_slice %29 {offsets = [0, 0], sizes = [4, 241], strides = [1, 1]} : vector<4x256xf32> to vector<4x241xf32>
    %41 = tpu.concatenate %39, %40 in 1 : vector<4x15xf32>, vector<4x241xf32> -> vector<4x256xf32>
    %42 = vector.extract_strided_slice %29 {offsets = [0, 1], sizes = [4, 255], strides = [1, 1]} : vector<4x256xf32> to vector<4x255xf32>
    %43 = vector.extract_strided_slice %29 {offsets = [0, 0], sizes = [4, 1], strides = [1, 1]} : vector<4x256xf32> to vector<4x1xf32>
    %44 = tpu.concatenate %42, %43 in 1 : vector<4x255xf32>, vector<4x1xf32> -> vector<4x256xf32>
    %c15_i32 = arith.constant 15 : i32
    %45 = vector.broadcast %c15_i32 : i32 to vector<4x256xi32>
    %46 = arith.cmpi slt, %26, %45 : vector<4x256xi32>
    %47 = arith.select %46, %44, %41 : vector<4x256xi1>, vector<4x256xf32>
    %48 = vector.extract_strided_slice %9 {offsets = [0, 255], sizes = [4, 1], strides = [1, 1]} : vector<4x256xf32> to vector<4x1xf32>
    %49 = vector.extract_strided_slice %9 {offsets = [0, 0], sizes = [4, 255], strides = [1, 1]} : vector<4x256xf32> to vector<4x255xf32>
    %50 = tpu.concatenate %48, %49 in 1 : vector<4x1xf32>, vector<4x255xf32> -> vector<4x256xf32>
    %51 = vector.extract_strided_slice %9 {offsets = [0, 15], sizes = [4, 241], strides = [1, 1]} : vector<4x256xf32> to vector<4x241xf32>
    %52 = vector.extract_strided_slice %9 {offsets = [0, 0], sizes = [4, 15], strides = [1, 1]} : vector<4x256xf32> to vector<4x15xf32>
    %53 = tpu.concatenate %51, %52 in 1 : vector<4x241xf32>, vector<4x15xf32> -> vector<4x256xf32>
    %c1_i32_10 = arith.constant 1 : i32
    %54 = vector.broadcast %c1_i32_10 : i32 to vector<4x256xi32>
    %55 = arith.cmpi slt, %26, %54 : vector<4x256xi32>
    %56 = arith.select %55, %53, %50 : vector<4x256xi1>, vector<4x256xf32>
    %57 = vector.extract_strided_slice %9 {offsets = [0, 241], sizes = [4, 15], strides = [1, 1]} : vector<4x256xf32> to vector<4x15xf32>
    %58 = vector.extract_strided_slice %9 {offsets = [0, 0], sizes = [4, 241], strides = [1, 1]} : vector<4x256xf32> to vector<4x241xf32>
    %59 = tpu.concatenate %57, %58 in 1 : vector<4x15xf32>, vector<4x241xf32> -> vector<4x256xf32>
    %60 = vector.extract_strided_slice %9 {offsets = [0, 1], sizes = [4, 255], strides = [1, 1]} : vector<4x256xf32> to vector<4x255xf32>
    %61 = vector.extract_strided_slice %9 {offsets = [0, 0], sizes = [4, 1], strides = [1, 1]} : vector<4x256xf32> to vector<4x1xf32>
    %62 = tpu.concatenate %60, %61 in 1 : vector<4x255xf32>, vector<4x1xf32> -> vector<4x256xf32>
    %c15_i32_11 = arith.constant 15 : i32
    %63 = vector.broadcast %c15_i32_11 : i32 to vector<4x256xi32>
    %64 = arith.cmpi slt, %26, %63 : vector<4x256xi32>
    %65 = arith.select %64, %62, %59 : vector<4x256xi1>, vector<4x256xf32>
    %66 = vector.extract_strided_slice %9 {offsets = [0, 16], sizes = [4, 240], strides = [1, 1]} : vector<4x256xf32> to vector<4x240xf32>
    %67 = vector.extract_strided_slice %9 {offsets = [0, 0], sizes = [4, 16], strides = [1, 1]} : vector<4x256xf32> to vector<4x16xf32>
    %68 = tpu.concatenate %66, %67 in 1 : vector<4x240xf32>, vector<4x16xf32> -> vector<4x256xf32>
    %69 = vector.extract_strided_slice %68 {offsets = [0, 255], sizes = [4, 1], strides = [1, 1]} : vector<4x256xf32> to vector<4x1xf32>
    %70 = vector.extract_strided_slice %68 {offsets = [0, 0], sizes = [4, 255], strides = [1, 1]} : vector<4x256xf32> to vector<4x255xf32>
    %71 = tpu.concatenate %69, %70 in 1 : vector<4x1xf32>, vector<4x255xf32> -> vector<4x256xf32>
    %72 = vector.extract_strided_slice %68 {offsets = [0, 15], sizes = [4, 241], strides = [1, 1]} : vector<4x256xf32> to vector<4x241xf32>
    %73 = vector.extract_strided_slice %68 {offsets = [0, 0], sizes = [4, 15], strides = [1, 1]} : vector<4x256xf32> to vector<4x15xf32>
    %74 = tpu.concatenate %72, %73 in 1 : vector<4x241xf32>, vector<4x15xf32> -> vector<4x256xf32>
    %c1_i32_12 = arith.constant 1 : i32
    %75 = vector.broadcast %c1_i32_12 : i32 to vector<4x256xi32>
    %76 = arith.cmpi slt, %26, %75 : vector<4x256xi32>
    %77 = arith.select %76, %74, %71 : vector<4x256xi1>, vector<4x256xf32>
    %78 = vector.extract_strided_slice %68 {offsets = [0, 241], sizes = [4, 15], strides = [1, 1]} : vector<4x256xf32> to vector<4x15xf32>
    %79 = vector.extract_strided_slice %68 {offsets = [0, 0], sizes = [4, 241], strides = [1, 1]} : vector<4x256xf32> to vector<4x241xf32>
    %80 = tpu.concatenate %78, %79 in 1 : vector<4x15xf32>, vector<4x241xf32> -> vector<4x256xf32>
    %81 = vector.extract_strided_slice %68 {offsets = [0, 1], sizes = [4, 255], strides = [1, 1]} : vector<4x256xf32> to vector<4x255xf32>
    %82 = vector.extract_strided_slice %68 {offsets = [0, 0], sizes = [4, 1], strides = [1, 1]} : vector<4x256xf32> to vector<4x1xf32>
    %83 = tpu.concatenate %81, %82 in 1 : vector<4x255xf32>, vector<4x1xf32> -> vector<4x256xf32>
    %c15_i32_13 = arith.constant 15 : i32
    %84 = vector.broadcast %c15_i32_13 : i32 to vector<4x256xi32>
    %85 = arith.cmpi slt, %26, %84 : vector<4x256xi32>
    %86 = arith.select %85, %83, %80 : vector<4x256xi1>, vector<4x256xf32>
    %87 = tpu.concatenate %38, %29, %47, %56, %9, %65, %77, %68, %86 in 0 : vector<4x256xf32>, vector<4x256xf32>, vector<4x256xf32>, vector<4x256xf32>, vector<4x256xf32>, vector<4x256xf32>, vector<4x256xf32>, vector<4x256xf32>, vector<4x256xf32> -> vector<36x256xf32>
    %c0_14 = arith.constant 0 : index
    %c0_15 = arith.constant 0 : index
    %88 = vector.load %arg4[%c0_14, %c0_15] : memref<8x36xf32, #tpu.memory_space<vmem>>, vector<8x36xf32>
    %cst_16 = arith.constant dense<0.000000e+00> : vector<8x256xf32>
    %89 = tpu.matmul %88, %87, %cst_16 {dimension_numbers = #tpu.dot_dimension_numbers<[1], [0], [0], [1], [0, 0, 1, 1], [], []>} : vector<8x36xf32>, vector<36x256xf32>, vector<8x256xf32> -> vector<8x256xf32>
    %c0_17 = arith.constant 0 : index
    %c0_18 = arith.constant 0 : index
    %90 = vector.load %arg5[%c0_17, %c0_18] : memref<8x1xf32, #tpu.memory_space<vmem>>, vector<8x1xf32>
    %91 = vector.broadcast %90 : vector<8x1xf32> to vector<8x256xf32>
    %92 = arith.mulf %89, %91 : vector<8x256xf32>
    %c0_19 = arith.constant 0 : index
    %c0_20 = arith.constant 0 : index
    %93 = vector.load %arg6[%c0_19, %c0_20] : memref<8x1xf32, #tpu.memory_space<vmem>>, vector<8x1xf32>
    %94 = vector.broadcast %93 : vector<8x1xf32> to vector<8x256xf32>
    %95 = arith.addf %92, %94 : vector<8x256xf32>
    %cst_21 = arith.constant 0.000000e+00 : f32
    %96 = vector.broadcast %cst_21 : f32 to vector<8x256xf32>
    %97 = arith.maximumf %95, %96 : vector<8x256xf32>
    %98 = tpu.iota {dimensions = array<i32: 1>} : vector<8x256xi32>
    %c16_i32_22 = arith.constant 16 : i32
    %c0_i32_23 = arith.constant 0 : i32
    %99 = arith.cmpi eq, %c16_i32_22, %c0_i32_23 : i32
    %c1_i32_24 = arith.constant 1 : i32
    %100 = arith.select %99, %c1_i32_24, %c16_i32_22 : i32
    %101 = vector.broadcast %100 : i32 to vector<8x256xi32>
    %102 = arith.remsi %98, %101 : vector<8x256xi32>
    %c0_i32_25 = arith.constant 0 : i32
    %103 = vector.broadcast %c0_i32_25 : i32 to vector<8x256xi32>
    %104 = arith.cmpi ne, %102, %103 : vector<8x256xi32>
    %c0_i32_26 = arith.constant 0 : i32
    %105 = vector.broadcast %c0_i32_26 : i32 to vector<8x256xi32>
    %106 = arith.cmpi slt, %102, %105 : vector<8x256xi32>
    %c0_i32_27 = arith.constant 0 : i32
    %107 = arith.cmpi slt, %100, %c0_i32_27 : i32
    %108 = vector.broadcast %107 : i1 to vector<8x256xi1>
    %109 = vector.broadcast %108 : vector<8x256xi1> to vector<8x256xi1>
    %110 = arith.xori %106, %109 : vector<8x256xi1>
    %111 = arith.andi %110, %104 : vector<8x256xi1>
    %112 = vector.broadcast %100 : i32 to vector<8x256xi32>
    %113 = arith.addi %102, %112 : vector<8x256xi32>
    %114 = arith.select %111, %113, %102 : vector<8x256xi1>, vector<8x256xi32>
    %115 = vector.extract_strided_slice %97 {offsets = [0, 240], sizes = [8, 16], strides = [1, 1]} : vector<8x256xf32> to vector<8x16xf32>
    %116 = vector.extract_strided_slice %97 {offsets = [0, 0], sizes = [8, 240], strides = [1, 1]} : vector<8x256xf32> to vector<8x240xf32>
    %117 = tpu.concatenate %115, %116 in 1 : vector<8x16xf32>, vector<8x240xf32> -> vector<8x256xf32>
    %118 = vector.extract_strided_slice %117 {offsets = [0, 255], sizes = [8, 1], strides = [1, 1]} : vector<8x256xf32> to vector<8x1xf32>
    %119 = vector.extract_strided_slice %117 {offsets = [0, 0], sizes = [8, 255], strides = [1, 1]} : vector<8x256xf32> to vector<8x255xf32>
    %120 = tpu.concatenate %118, %119 in 1 : vector<8x1xf32>, vector<8x255xf32> -> vector<8x256xf32>
    %121 = vector.extract_strided_slice %117 {offsets = [0, 15], sizes = [8, 241], strides = [1, 1]} : vector<8x256xf32> to vector<8x241xf32>
    %122 = vector.extract_strided_slice %117 {offsets = [0, 0], sizes = [8, 15], strides = [1, 1]} : vector<8x256xf32> to vector<8x15xf32>
    %123 = tpu.concatenate %121, %122 in 1 : vector<8x241xf32>, vector<8x15xf32> -> vector<8x256xf32>
    %c1_i32_28 = arith.constant 1 : i32
    %124 = vector.broadcast %c1_i32_28 : i32 to vector<8x256xi32>
    %125 = arith.cmpi slt, %114, %124 : vector<8x256xi32>
    %126 = arith.select %125, %123, %120 : vector<8x256xi1>, vector<8x256xf32>
    %127 = vector.extract_strided_slice %117 {offsets = [0, 241], sizes = [8, 15], strides = [1, 1]} : vector<8x256xf32> to vector<8x15xf32>
    %128 = vector.extract_strided_slice %117 {offsets = [0, 0], sizes = [8, 241], strides = [1, 1]} : vector<8x256xf32> to vector<8x241xf32>
    %129 = tpu.concatenate %127, %128 in 1 : vector<8x15xf32>, vector<8x241xf32> -> vector<8x256xf32>
    %130 = vector.extract_strided_slice %117 {offsets = [0, 1], sizes = [8, 255], strides = [1, 1]} : vector<8x256xf32> to vector<8x255xf32>
    %131 = vector.extract_strided_slice %117 {offsets = [0, 0], sizes = [8, 1], strides = [1, 1]} : vector<8x256xf32> to vector<8x1xf32>
    %132 = tpu.concatenate %130, %131 in 1 : vector<8x255xf32>, vector<8x1xf32> -> vector<8x256xf32>
    %c15_i32_29 = arith.constant 15 : i32
    %133 = vector.broadcast %c15_i32_29 : i32 to vector<8x256xi32>
    %134 = arith.cmpi slt, %114, %133 : vector<8x256xi32>
    %135 = arith.select %134, %132, %129 : vector<8x256xi1>, vector<8x256xf32>
    %136 = vector.extract_strided_slice %97 {offsets = [0, 255], sizes = [8, 1], strides = [1, 1]} : vector<8x256xf32> to vector<8x1xf32>
    %137 = vector.extract_strided_slice %97 {offsets = [0, 0], sizes = [8, 255], strides = [1, 1]} : vector<8x256xf32> to vector<8x255xf32>
    %138 = tpu.concatenate %136, %137 in 1 : vector<8x1xf32>, vector<8x255xf32> -> vector<8x256xf32>
    %139 = vector.extract_strided_slice %97 {offsets = [0, 15], sizes = [8, 241], strides = [1, 1]} : vector<8x256xf32> to vector<8x241xf32>
    %140 = vector.extract_strided_slice %97 {offsets = [0, 0], sizes = [8, 15], strides = [1, 1]} : vector<8x256xf32> to vector<8x15xf32>
    %141 = tpu.concatenate %139, %140 in 1 : vector<8x241xf32>, vector<8x15xf32> -> vector<8x256xf32>
    %c1_i32_30 = arith.constant 1 : i32
    %142 = vector.broadcast %c1_i32_30 : i32 to vector<8x256xi32>
    %143 = arith.cmpi slt, %114, %142 : vector<8x256xi32>
    %144 = arith.select %143, %141, %138 : vector<8x256xi1>, vector<8x256xf32>
    %145 = vector.extract_strided_slice %97 {offsets = [0, 241], sizes = [8, 15], strides = [1, 1]} : vector<8x256xf32> to vector<8x15xf32>
    %146 = vector.extract_strided_slice %97 {offsets = [0, 0], sizes = [8, 241], strides = [1, 1]} : vector<8x256xf32> to vector<8x241xf32>
    %147 = tpu.concatenate %145, %146 in 1 : vector<8x15xf32>, vector<8x241xf32> -> vector<8x256xf32>
    %148 = vector.extract_strided_slice %97 {offsets = [0, 1], sizes = [8, 255], strides = [1, 1]} : vector<8x256xf32> to vector<8x255xf32>
    %149 = vector.extract_strided_slice %97 {offsets = [0, 0], sizes = [8, 1], strides = [1, 1]} : vector<8x256xf32> to vector<8x1xf32>
    %150 = tpu.concatenate %148, %149 in 1 : vector<8x255xf32>, vector<8x1xf32> -> vector<8x256xf32>
    %c15_i32_31 = arith.constant 15 : i32
    %151 = vector.broadcast %c15_i32_31 : i32 to vector<8x256xi32>
    %152 = arith.cmpi slt, %114, %151 : vector<8x256xi32>
    %153 = arith.select %152, %150, %147 : vector<8x256xi1>, vector<8x256xf32>
    %154 = vector.extract_strided_slice %97 {offsets = [0, 16], sizes = [8, 240], strides = [1, 1]} : vector<8x256xf32> to vector<8x240xf32>
    %155 = vector.extract_strided_slice %97 {offsets = [0, 0], sizes = [8, 16], strides = [1, 1]} : vector<8x256xf32> to vector<8x16xf32>
    %156 = tpu.concatenate %154, %155 in 1 : vector<8x240xf32>, vector<8x16xf32> -> vector<8x256xf32>
    %157 = vector.extract_strided_slice %156 {offsets = [0, 255], sizes = [8, 1], strides = [1, 1]} : vector<8x256xf32> to vector<8x1xf32>
    %158 = vector.extract_strided_slice %156 {offsets = [0, 0], sizes = [8, 255], strides = [1, 1]} : vector<8x256xf32> to vector<8x255xf32>
    %159 = tpu.concatenate %157, %158 in 1 : vector<8x1xf32>, vector<8x255xf32> -> vector<8x256xf32>
    %160 = vector.extract_strided_slice %156 {offsets = [0, 15], sizes = [8, 241], strides = [1, 1]} : vector<8x256xf32> to vector<8x241xf32>
    %161 = vector.extract_strided_slice %156 {offsets = [0, 0], sizes = [8, 15], strides = [1, 1]} : vector<8x256xf32> to vector<8x15xf32>
    %162 = tpu.concatenate %160, %161 in 1 : vector<8x241xf32>, vector<8x15xf32> -> vector<8x256xf32>
    %c1_i32_32 = arith.constant 1 : i32
    %163 = vector.broadcast %c1_i32_32 : i32 to vector<8x256xi32>
    %164 = arith.cmpi slt, %114, %163 : vector<8x256xi32>
    %165 = arith.select %164, %162, %159 : vector<8x256xi1>, vector<8x256xf32>
    %166 = vector.extract_strided_slice %156 {offsets = [0, 241], sizes = [8, 15], strides = [1, 1]} : vector<8x256xf32> to vector<8x15xf32>
    %167 = vector.extract_strided_slice %156 {offsets = [0, 0], sizes = [8, 241], strides = [1, 1]} : vector<8x256xf32> to vector<8x241xf32>
    %168 = tpu.concatenate %166, %167 in 1 : vector<8x15xf32>, vector<8x241xf32> -> vector<8x256xf32>
    %169 = vector.extract_strided_slice %156 {offsets = [0, 1], sizes = [8, 255], strides = [1, 1]} : vector<8x256xf32> to vector<8x255xf32>
    %170 = vector.extract_strided_slice %156 {offsets = [0, 0], sizes = [8, 1], strides = [1, 1]} : vector<8x256xf32> to vector<8x1xf32>
    %171 = tpu.concatenate %169, %170 in 1 : vector<8x255xf32>, vector<8x1xf32> -> vector<8x256xf32>
    %c15_i32_33 = arith.constant 15 : i32
    %172 = vector.broadcast %c15_i32_33 : i32 to vector<8x256xi32>
    %173 = arith.cmpi slt, %114, %172 : vector<8x256xi32>
    %174 = arith.select %173, %171, %168 : vector<8x256xi1>, vector<8x256xf32>
    %175 = tpu.concatenate %126, %117, %135, %144, %97, %153, %165, %156, %174 in 0 : vector<8x256xf32>, vector<8x256xf32>, vector<8x256xf32>, vector<8x256xf32>, vector<8x256xf32>, vector<8x256xf32>, vector<8x256xf32>, vector<8x256xf32>, vector<8x256xf32> -> vector<72x256xf32>
    %c0_34 = arith.constant 0 : index
    %c0_35 = arith.constant 0 : index
    %176 = vector.load %arg7[%c0_34, %c0_35] : memref<8x72xf32, #tpu.memory_space<vmem>>, vector<8x72xf32>
    %cst_36 = arith.constant dense<0.000000e+00> : vector<8x256xf32>
    %177 = tpu.matmul %176, %175, %cst_36 {dimension_numbers = #tpu.dot_dimension_numbers<[1], [0], [0], [1], [0, 0, 1, 1], [], []>} : vector<8x72xf32>, vector<72x256xf32>, vector<8x256xf32> -> vector<8x256xf32>
    %cst_37 = arith.constant 0.000000e+00 : f32
    %178 = vector.broadcast %cst_37 : f32 to vector<2x256xf32>
    %cst_38 = arith.constant 0.000000e+00 : f32
    %179 = vector.broadcast %cst_38 : f32 to vector<2x256xf32>
    %180 = tpu.concatenate %178, %1, %179 in 0 : vector<2x256xf32>, vector<4x256xf32>, vector<2x256xf32> -> vector<8x256xf32>
    %181 = arith.addf %177, %180 : vector<8x256xf32>
    %c0_39 = arith.constant 0 : index
    %c0_40 = arith.constant 0 : index
    %c0_41 = arith.constant 0 : index
    %182 = vector.load %arg8[%c0_39, %c0_40, %c0_41] : memref<1x8x256xf32, #tpu.memory_space<vmem>>, vector<1x8x256xf32>
    %183 = vector.shape_cast %182 : vector<1x8x256xf32> to vector<8x256xf32>
    %184 = vector.shape_cast %181 : vector<8x256xf32> to vector<1x8x256xf32>
    tpu.vector_store %arg8[%c0_39, %c0_40, %c0_41], %184 {strides = array<i32>} : memref<1x8x256xf32, #tpu.memory_space<vmem>>, vector<1x8x256xf32>,
    return
  }
  func.func @transform_0(%arg0: i32) -> (i32, i32, i32) {
    %c0_i32 = arith.constant 0 : i32
    %c0_i32_0 = arith.constant 0 : i32
    %c0_i32_1 = arith.constant 0 : i32
    return %arg0, %c0_i32, %c0_i32_0 : i32, i32, i32
  }
  func.func @transform_1(%arg0: i32) -> (i32, i32) {
    %c0_i32 = arith.constant 0 : i32
    %c0_i32_0 = arith.constant 0 : i32
    %c0_i32_1 = arith.constant 0 : i32
    return %c0_i32, %c0_i32_0 : i32, i32
  }
  func.func @transform_2(%arg0: i32) -> (i32, i32) {
    %c0_i32 = arith.constant 0 : i32
    %c0_i32_0 = arith.constant 0 : i32
    %c0_i32_1 = arith.constant 0 : i32
    return %c0_i32, %c0_i32_0 : i32, i32
  }
  func.func @transform_3(%arg0: i32) -> (i32, i32) {
    %c0_i32 = arith.constant 0 : i32
    %c0_i32_0 = arith.constant 0 : i32
    %c0_i32_1 = arith.constant 0 : i32
    return %c0_i32, %c0_i32_0 : i32, i32
  }
  func.func @transform_4(%arg0: i32) -> (i32, i32) {
    %c0_i32 = arith.constant 0 : i32
    %c0_i32_0 = arith.constant 0 : i32
    %c0_i32_1 = arith.constant 0 : i32
    return %c0_i32, %c0_i32_0 : i32, i32
  }
  func.func @transform_5(%arg0: i32) -> (i32, i32) {
    %c0_i32 = arith.constant 0 : i32
    %c0_i32_0 = arith.constant 0 : i32
    %c0_i32_1 = arith.constant 0 : i32
    return %c0_i32, %c0_i32_0 : i32, i32
  }
  func.func @transform_6(%arg0: i32) -> (i32, i32) {
    %c0_i32 = arith.constant 0 : i32
    %c0_i32_0 = arith.constant 0 : i32
    %c0_i32_1 = arith.constant 0 : i32
    return %c0_i32, %c0_i32_0 : i32, i32
  }
  func.func @transform_7(%arg0: i32) -> (i32, i32, i32) {
    %c0_i32 = arith.constant 0 : i32
    %c0_i32_0 = arith.constant 0 : i32
    %c0_i32_1 = arith.constant 0 : i32
    return %arg0, %c0_i32, %c0_i32_0 : i32, i32, i32
  }
}

</mosaic_0001>

<bundles_post_ra>
// kernel: basic_block_forward.1
= control target key start
LH: loop header
LB: loop body
LE: loop exit
PB: predicated region body
PF: predicated region fallthrough
CT: control target
= control target key end

     0   :  { %s1131_s24 = smov 0   ;;  %s1406_s0 = inlined_call_operand.vmem [shape: f32[2,4,256], index: 0, kind: input, shape index: {}]   ;;  %s1407_s1 = inlined_call_operand.vmem [shape: f32[4,1], index: 1, kind: input, shape index: {}]   ;;  %s1408_s2 = inlined_call_operand.vmem [shape: f32[4,1], index: 2, kind: input, shape index: {}]   ;;  %s1409_s3 = inlined_call_operand.vmem [shape: f32[8,36], index: 3, kind: input, shape index: {}]   ;;  %s1410_s4 = inlined_call_operand.vmem [shape: f32[8,1], index: 4, kind: input, shape index: {}]   ;;  %s1411_s5 = inlined_call_operand.vmem [shape: f32[8,1], index: 5, kind: input, shape index: {}]   ;;  %s1412_s6 = inlined_call_operand.vmem [shape: f32[8,72], index: 6, kind: input, shape index: {}]   ;;  %s1413_s7 = inlined_call_operand.vmem [shape: f32[2,8,256], index: 7, kind: output, shape index: {}]  }
   0x1 LB: > { %s903_s25 = sadd.s32 4294967295, %s1080_s24   ;;  %p907_p0 = scmp.ge.s32.totalorder %s1080_s24, 1  ;;  %s1080_s24 = sphi %s1131_s24, %s17_s24  }
   0x2   : > { %p237_p1 = scmp.lt.s32.totalorder %s1080_s24, 3 }
   0x4   : > { %p238_p2 = pnand %p907_p0, %p237_p1 }
   0x5   : > { %v280_v0 = vld [vmem:[%s1407_s1] sm:$0xf] (!%p238_p2)  ;;  %v1082_v1 = vmov (!%p238_p2), 0   ;;  %p269_p3 = scmp.lt.s32.totalorder (!%p238_p2), %s903_s25, 1  ;;  %v1083_v3 = vmov (!%p238_p2), 839922192   ;;  %v288_v5 = vlaneseq (!%p238_p2) }
   0x6   : > { %241 = sbr.rel (%p238_p2) target bundleno = 1104 (0x450), region = 48  ;;  %961 = vset.pattern.permute.xlu0 (!%p238_p2), %v1082_v1  ;;  %1017 = vset.pattern.permute.xlu1 (!%p238_p2), %v1082_v1  ;;  %v294_v2 = vld [vmem:[%s1408_s2] sm:$0xf] (!%p238_p2)  ;;  %v286_v4 = vunpack.c.l.s4 (!%p238_p2), %v1083_v3  ;;  %s1084_s11 = smov (!%p238_p2), 112   ;;  %vm343_vm0 = vcmask (!%p238_p2), 130048   ;;  %vm440_vm1 = vcmask (!%p238_p2), 916480  }
   0x7   : > { %283 = vperm.xlu0 (!%p238_p2), %961, %v280_v0   ;;  %v289_v7 = vshrl.u32 (!%p238_p2), %v288_v5, 7  ;;  %s1085_s12 = smov (!%p238_p2), 16   ;;  %s1086_s13 = smov (!%p238_p2), 113   ;;  %v1090_v33 = vmov (!%p238_p2), 0.0   ;;  %v606_v34 = vld [vmem:[%s1411_s5] sm:$0xff] (!%p238_p2)  ;;  %v310_v36 = vand.u32 (!%p238_p2), 127, %v288_v5 }
   0x8   : > { %v287_v6 = vunpack.c.0.s8 (!%p238_p2), %v286_v4  ;;  %s1087_s14 = smov (!%p238_p2), 127   ;;  %s1088_s15 = smov (!%p238_p2), 1   ;;  %591 = vmatprep.mubr.f32.mxu0 (!%p238_p2), %v1090_v33  ;;  %839 = vmatprep.mubr.f32.mxu1 (!%p238_p2), %v1090_v33  ;;  %v598_v35 = vld [vmem:[%s1410_s4] sm:$0xff] (!%p238_p2)  ;;  %vm362_vm2 = vcmask (!%p238_p2), 924672   ;;  %vm353_vm3 = vcmask (!%p238_p2), 7168   ;;  %vm377_vm7 = vcmask (!%p238_p2), 121856  }
   0x9   : > { %s1089_s16 = smov (!%p238_p2), 15   ;;  %v311_v39 = vadd.s32 (!%p238_p2), 128, %v310_v36  ;;  %v316_v40 = vand.u32 (!%p238_p2), 15, %v310_v36  ;;  %vm386_vm8 = vcmask (!%p238_p2), 1039360   ;;  %vm507_vm10 = vcmask (!%p238_p2), 1043456  }
   0xa   : > { %v290_v8 = vsub.s32 (!%p238_p2), %v287_v6, %v289_v7  ;;  %vm517_vm11 = vcmask (!%p238_p2), 293888   ;;  %vm771_vm12 = vcmask (!%p238_p2), 588800   ;;  %vm765_vm13 = vcmask (!%p238_p2), 1041408  }
   0xb   : > { %297 = vperm.xlu0 (!%p238_p2), %961, %v294_v2   ;;  %v323_v42 = vand.u32 (!%p238_p2), 15, %v311_v39  ;;  %vm1213_vm4 = vcmp.lt.s32.totalorder (!%p238_p2), %v316_v40, 1  ;;  %vm1217_vm5 = vcmp.lt.s32.totalorder (!%p238_p2), %v316_v40, 15  ;;  %vm768_vm14 = vcmask (!%p238_p2), 1045504  }
   0xd   : > { %s1423_s25 = smov (!%p269_p3, %s903_s25), 1  ;;  %vm1221_vm6 = vcmp.lt.s32.totalorder %v323_v42, 15  ;;  %vm1225_vm9 = vcmp.lt.s32.totalorder %v323_v42, 1 }
   0xe   : > { %s918_s30 = sshll.u32 %s1423_s25, 3  ;;  %s919_s27 = sshll.u32 %s1423_s25, 4 }
   0xf   : > { %s273_s10 = scalar_lea.vmem %s1406_s0, %s918_s30  ;;  %s278_s30 = scalar_lea.vmem %s1413_s7, %s919_s27 }
  0x10   : > { %v1151_v11 = vld [vmem:[%s273_s10] sm:$0xff] }
  0x86   : > { %v284_v9 = vpop.permute.xlu0 %283 }
  0x87   : > { %v291_v10 = vrot.slane %v284_v9, %v290_v8 }
  0x89   : > { %v293_v13 = vmul.f32 %v291_v10, %v1151_v11 }
  0x8a   : > { %v298_v12 = vpop.permute.xlu0 %297 }
  0x8b   : > { %v305_v14 = vrot.slane %v298_v12, %v290_v8 }
  0x8d   : > { %v307_v15 = vadd.f32 %v305_v14, %v293_v13 }
  0x8f   : > { %v1154_v16 = vmax.f32 %v307_v15, 0.0 }
  0x91   : > { %v1158_v17 = vcombine.high %v1154_v16, %v1154_v16 }
  0x93   : > { %438 = vrot.lane.b32.xlu0 %v1158_v17, %s1084_s11  ;;  %v962_v18 = vpack.i.bf16 %v1154_v16, %v1158_v17  ;;  %v972_v19 = vpack.i.bf16 %v1158_v17, %v1154_v16 }
  0x95   : > { %963 = vrot.lane.b32.xlu1 %v962_v18, %s1085_s12 }
  0x97   : > { %973 = vrot.lane.b32.xlu0 %v972_v19, %s1086_s13 }
  0x99   : > { %436 = vrot.lane.b32.xlu1 %v1154_v16, %s1084_s11 }
  0x9b   : > { %983 = vrot.lane.b32.xlu0 %v972_v19, %s1087_s14 }
  0x9d   : > { %968 = vrot.lane.b32.xlu1 %v962_v18, %s1088_s15 }
  0xa1   : > { %978 = vrot.lane.b32.xlu1 %v962_v18, %s1089_s16 }
 0x105   : > { %v439_v28 = vpop.permute.xlu0 %438 }
 0x107   : > { %v964_v20 = vpop.permute.xlu1 %963 }
 0x108   : > { %v966_v21 = vunpack.i.h.bf16 %v964_v20  ;;  %v965_v22 = vunpack.i.l.bf16 %v964_v20 }
 0x109   : > { %v974_v38 = vpop.permute.xlu0 %973 }
 0x10a   : > { %v1174_v23 = vsel %vm343_vm0, %v966_v21, %v965_v22  ;;  %v1177_v24 = vsel %vm343_vm0, %v965_v22, %v966_v21  ;;  %v976_v43 = vunpack.i.h.bf16 %v974_v38  ;;  %v975_v44 = vunpack.i.l.bf16 %v974_v38 }
 0x10b   : > { %v992_v25 = vpack.i.bf16 %v1174_v23, %v1177_v24  ;;  %v987_v26 = vpack.i.bf16 %v1177_v24, %v1174_v23  ;;  %v437_v27 = vpop.permute.xlu1 %436  ;;  %v487_v21 = vrot.slane %v1174_v23, 4  ;;  %v486_v22 = vrot.slane %v1177_v24, 4 }
 0x10c   : > { %v1186_v29 = vsel %vm440_vm1, %v437_v27, %v439_v28  ;;  %v1189_v30 = vsel %vm440_vm1, %v439_v28, %v437_v27  ;;  %v409_v56 = vsel %vm362_vm2, %v975_v44, %v976_v43  ;;  %v413_v57 = vsel %vm362_vm2, %v976_v43, %v975_v44 }
 0x10d   : > { %993 = vrot.lane.b32.xlu0 %v992_v25, %s1086_s13  ;;  %988 = vrot.lane.b32.xlu1 %v987_v26, %s1088_s15  ;;  %v1012_v31 = vpack.i.bf16 %v1189_v30, %v1186_v29  ;;  %v1007_v32 = vpack.i.bf16 %v1186_v29, %v1189_v30  ;;  %v984_v45 = vpop.permute.xlu0 %983  ;;  %v503_v60 = vrot.slane %v1186_v29, 4  ;;  %v504_v61 = vrot.slane %v1189_v30, 4 }
 0x10e   : > { %v986_v53 = vunpack.i.h.bf16 %v984_v45  ;;  %v985_v54 = vunpack.i.l.bf16 %v984_v45 }
 0x10f   : > { %v969_v37 = vpop.permute.xlu1 %968 }
 0x110   : > { %v971_v46 = vunpack.i.h.bf16 %v969_v37  ;;  %v970_v47 = vunpack.i.l.bf16 %v969_v37  ;;  %v429_v6 = vsel %vm386_vm8, %v985_v54, %v986_v53  ;;  %v433_v7 = vsel %vm386_vm8, %v986_v53, %v985_v54 }
 0x111   : > { %1003 = vrot.lane.b32.xlu0 %v992_v25, %s1087_s14  ;;  %998 = vrot.lane.b32.xlu1 %v987_v26, %s1089_s16 }
 0x112   : > { %v401_v58 = vsel %vm353_vm3, %v971_v46, %v970_v47  ;;  %v404_v59 = vsel %vm353_vm3, %v970_v47, %v971_v46 }
 0x113   : > { %v979_v41 = vpop.permute.xlu1 %978  ;;  %v415_v8 = vsel %vm1225_vm9, %v413_v57, %v401_v58  ;;  %v414_v9 = vsel %vm1213_vm4, %v409_v56, %v404_v59 }
 0x114   : > { %v981_v48 = vunpack.i.h.bf16 %v979_v41  ;;  %v980_v49 = vunpack.i.l.bf16 %v979_v41  ;;  %v492_v33 = vrot.slane %v414_v9, 4 }
 0x115   : > { %1013 = vrot.lane.b32.xlu0 %v1012_v31, %s1086_s13  ;;  %1008 = vrot.lane.b32.xlu1 %v1007_v32, %s1088_s15  ;;  %v493_v31 = vrot.slane %v415_v8, 4 }
 0x116   : > { %v421_v62 = vsel %vm377_vm7, %v981_v48, %v980_v49  ;;  %v424_v63 = vsel %vm377_vm7, %v980_v49, %v981_v48 }
 0x117   : > { %v434_v15 = vsel %vm1217_vm5, %v429_v6, %v424_v63  ;;  %v435_v18 = vsel %vm1221_vm6, %v433_v7, %v421_v62 }
 0x118   : > { %v499_v36 = vrot.slane %v434_v15, 4  ;;  %v500_v37 = vrot.slane %v435_v18, 4 }
 0x119   : > { %469 = vrot.lane.b32.xlu0 %v1186_v29, %s1089_s16  ;;  %466 = vrot.lane.b32.xlu1 %v1189_v30, %s1089_s16 }
 0x11a   : > { %v512_v6 = vsel %vm507_vm10, %v1154_v16, %v499_v36  ;;  %v516_v16 = vld [vmem:[%s1409_s3] sm:$0xff] }
 0x11d   : > { %477 = vrot.lane.b32.xlu0 %v1189_v30, %s1087_s14  ;;  %475 = vrot.lane.b32.xlu1 %v1186_v29, %s1087_s14 }
 0x121   : > { %609 = vperm.xlu0 %961, %v606_v34   ;;  %601 = vperm.xlu1 %1017, %v598_v35  }
 0x17f   : > { %v994_v0 = vpop.permute.xlu0 %993  ;;  %v989_v1 = vpop.permute.xlu1 %988 }
 0x180   : > { %v996_v2 = vunpack.i.h.bf16 %v994_v0  ;;  %v995_v3 = vunpack.i.l.bf16 %v994_v0  ;;  %v991_v4 = vunpack.i.h.bf16 %v989_v1  ;;  %v990_v5 = vunpack.i.l.bf16 %v989_v1 }
 0x182   : > { %v363_v10 = vsel %vm362_vm2, %v995_v3, %v996_v2  ;;  %v357_v12 = vsel %vm353_vm3, %v990_v5, %v991_v4  ;;  %v354_v13 = vsel %vm353_vm3, %v991_v4, %v990_v5  ;;  %v367_v14 = vsel %vm362_vm2, %v996_v2, %v995_v3 }
 0x183   : > { %v1004_v19 = vpop.permute.xlu0 %1003  ;;  %v999_v20 = vpop.permute.xlu1 %998  ;;  %v371_v30 = vsel %vm1225_vm9, %v367_v14, %v354_v13  ;;  %v370_v32 = vsel %vm1213_vm4, %v363_v10, %v357_v12  ;;  %v513_v2 = vsel %vm507_vm10, %v1158_v17, %v500_v37 }
 0x184   : > { %v1006_v25 = vunpack.i.h.bf16 %v1004_v19  ;;  %v1005_v26 = vunpack.i.l.bf16 %v1004_v19  ;;  %v1001_v27 = vunpack.i.h.bf16 %v999_v20  ;;  %v1000_v28 = vunpack.i.l.bf16 %v999_v20 }
 0x185   : > { %v509_v46 = vsel %vm507_vm10, %v371_v30, %v487_v21  ;;  %v508_v48 = vsel %vm507_vm10, %v370_v32, %v486_v22 }
 0x186   : > { %v387_v34 = vsel %vm386_vm8, %v1005_v26, %v1006_v25  ;;  %v381_v35 = vsel %vm377_vm7, %v1000_v28, %v1001_v27  ;;  %v378_v23 = vsel %vm377_vm7, %v1001_v27, %v1000_v28  ;;  %v391_v24 = vsel %vm386_vm8, %v1006_v25, %v1005_v26 }
 0x187   : > { %v1014_v38 = vpop.permute.xlu0 %1013  ;;  %v1009_v39 = vpop.permute.xlu1 %1008  ;;  %v395_v40 = vsel %vm1221_vm6, %v391_v24, %v378_v23  ;;  %v394_v41 = vsel %vm1217_vm5, %v387_v34, %v381_v35 }
 0x188   : > { %v1016_v42 = vunpack.i.h.bf16 %v1014_v38  ;;  %v1015_v43 = vunpack.i.l.bf16 %v1014_v38  ;;  %v1011_v44 = vunpack.i.h.bf16 %v1009_v39  ;;  %v1010_v45 = vunpack.i.l.bf16 %v1009_v39 }
 0x189   : > { %v511_v47 = vsel %vm507_vm10, %v395_v40, %v493_v31  ;;  %v510_v49 = vsel %vm507_vm10, %v394_v41, %v492_v33 }
 0x18a   : > { %v459_v53 = vsel %vm362_vm2, %v1015_v43, %v1016_v42  ;;  %v463_v54 = vsel %vm362_vm2, %v1016_v42, %v1015_v43  ;;  %v451_v56 = vsel %vm353_vm3, %v1011_v44, %v1010_v45  ;;  %v454_v57 = vsel %vm353_vm3, %v1010_v45, %v1011_v44 }
 0x18b   : > { %v470_v58 = vpop.permute.xlu0 %469  ;;  %v467_v59 = vpop.permute.xlu1 %466  ;;  %v920_v62 = vpack.c.bf16 %v511_v47, %v509_v46  ;;  %v922_v63 = vpack.c.bf16 %v510_v49, %v508_v48  ;;  %v465_v0 = vsel %vm1225_vm9, %v463_v54, %v451_v56  ;;  %v464_v1 = vsel %vm1213_vm4, %v459_v53, %v454_v57 }
 0x18c   : > { %v515_v3 = vsel %vm507_vm10, %v465_v0, %v504_v61  ;;  %v514_v4 = vsel %vm507_vm10, %v464_v1, %v503_v60  ;;  %v471_v10 = vsel %vm377_vm7, %v470_v58, %v467_v59  ;;  %v474_v60 = vsel %vm377_vm7, %v467_v59, %v470_v58 }
 0x18d   : > { %921 = vmatprep.subr.bf16.mxu0 %v920_v62  ;;  %v924_v5 = vpack.c.bf16 %v515_v3, %v513_v2  ;;  %v926_v7 = vpack.c.bf16 %v514_v4, %v512_v6 }
 0x18e   : > { %923 = vmatpush1.bf16.msra.mxu0 %v922_v63 }
 0x18f   : > { %v478_v8 = vpop.permute.xlu0 %477  ;;  %v476_v9 = vpop.permute.xlu1 %475  ;;  %925 = vmatprep.subr.bf16.mxu0 %v924_v5 }
 0x190   : > { %v483_v17 = vsel %vm386_vm8, %v478_v8, %v476_v9  ;;  %v479_v29 = vsel %vm386_vm8, %v476_v9, %v478_v8 }
 0x191   : > { %v485_v61 = vsel %vm1221_vm6, %v483_v17, %v471_v10  ;;  %v484_v12 = vsel %vm1217_vm5, %v479_v29, %v474_v60 }
 0x192   : > { %927 = vmatpush1.bf16.msra.mxu0 %v926_v7 }
 0x193   : > { %912 = vmatprep.subr.msk.mxu0 %vm507_vm10, %v485_v61 }
 0x196   : > { %913 = vmatpush1.msk.msra.mxu0 %vm507_vm10, %v484_v12 }
 0x197   : > { %914 = vmatmul.mubr.msk.f32.vlgmr.msra.gmra.mrb[0].mxu0 %vm517_vm11, %v516_v16 }
 0x1a0   : > { %v602_v13 = vpop.permute.xlu1 %601  ;;  %v610_v19 = vpop.permute.xlu0 %609 }
 0x26a   : > { %v593_v14 = vpop.f32.mrb[0].mxu0 }
 0x26b   : > { %v604_v15 = vmul.f32 %v602_v13, %v593_v14  ;;  %v595_v18 = vpop.f32.mrb[1].mxu0 }
 0x26c   : > { %v605_v20 = vmul.f32 %v602_v13, %v595_v18 }
 0x26d   : > { %v612_v21 = vadd.f32 %v610_v19, %v604_v15 }
 0x26e   : > { %v613_v22 = vadd.f32 %v610_v19, %v605_v20 }
 0x26f   : > { %v1298_v25 = vmax.f32 %v612_v21, 0.0 }
 0x270   : > { %v1300_v26 = vmax.f32 %v613_v22, 0.0 }
 0x271   : > { %708 = vrot.lane.b32.xlu0 %v1298_v25, %s1084_s11 }
 0x272   : > { %v1018_v27 = vpack.i.bf16 %v1298_v25, %v1300_v26  ;;  %v1028_v28 = vpack.i.bf16 %v1300_v26, %v1298_v25 }
 0x274   : > { %1019 = vrot.lane.b32.xlu1 %v1018_v27, %s1085_s12 }
 0x275   : > { %1024 = vrot.lane.b32.xlu0 %v1018_v27, %s1088_s15 }
 0x278   : > { %710 = vrot.lane.b32.xlu1 %v1300_v26, %s1084_s11 }
 0x27c   : > { %1029 = vrot.lane.b32.xlu1 %v1028_v28, %s1086_s13 }
 0x2e3   : > { %v709_v36 = vpop.permute.xlu0 %708 }
 0x2e6   : > { %v1020_v30 = vpop.permute.xlu1 %1019 }
 0x2e7   : > { %v1022_v31 = vunpack.i.h.bf16 %v1020_v30  ;;  %v1021_v32 = vunpack.i.l.bf16 %v1020_v30  ;;  %v1025_v41 = vpop.permute.xlu0 %1024 }
 0x2e8   : > { %v1027_v54 = vunpack.i.h.bf16 %v1025_v41  ;;  %v1026_v56 = vunpack.i.l.bf16 %v1025_v41 }
 0x2e9   : > { %v623_v33 = vsel %vm343_vm0, %v1022_v31, %v1021_v32  ;;  %v626_v34 = vsel %vm343_vm0, %v1021_v32, %v1022_v31 }
 0x2ea   : > { %v1038_v35 = vpack.i.bf16 %v623_v33, %v626_v34  ;;  %v1033_v23 = vpack.i.bf16 %v626_v34, %v623_v33  ;;  %v711_v24 = vpop.permute.xlu1 %710  ;;  %v673_v9 = vsel %vm353_vm3, %v1027_v54, %v1026_v56  ;;  %v676_v10 = vsel %vm353_vm3, %v1026_v56, %v1027_v54 }
 0x2eb   : > { %v1320_v37 = vsel %vm440_vm1, %v709_v36, %v711_v24  ;;  %v1323_v38 = vsel %vm440_vm1, %v711_v24, %v709_v36 }
 0x2ec   : > { %1039 = vrot.lane.b32.xlu1 %v1038_v35, %s1086_s13  ;;  %1034 = vrot.lane.b32.xlu0 %v1033_v23, %s1088_s15  ;;  %v1068_v39 = vpack.i.bf16 %v1323_v38, %v1320_v37  ;;  %v1063_v40 = vpack.i.bf16 %v1320_v37, %v1323_v38 }
 0x2ee   : > { %v1030_v42 = vpop.permute.xlu1 %1029 }
 0x2ef   : > { %v1032_v43 = vunpack.i.h.bf16 %v1030_v42  ;;  %v1031_v44 = vunpack.i.l.bf16 %v1030_v42 }
 0x2f0   : > { %1054 = vrot.lane.b32.xlu1 %v1038_v35, %s1087_s14  ;;  %1044 = vrot.lane.b32.xlu0 %v1033_v23, %s1089_s16 }
 0x2f1   : > { %v681_v63 = vsel %vm362_vm2, %v1031_v44, %v1032_v43  ;;  %v685_v0 = vsel %vm362_vm2, %v1032_v43, %v1031_v44 }
 0x2f2   : > { %v687_v18 = vsel %vm1225_vm9, %v685_v0, %v673_v9  ;;  %v686_v20 = vsel %vm1213_vm4, %v681_v63, %v676_v10 }
 0x2f4   : > { %1059 = vrot.lane.b32.xlu1 %v1028_v28, %s1087_s14  ;;  %1049 = vrot.lane.b32.xlu0 %v1018_v27, %s1089_s16 }
 0x2f8   : > { %1069 = vrot.lane.b32.xlu1 %v1068_v39, %s1086_s13  ;;  %1064 = vrot.lane.b32.xlu0 %v1063_v40, %s1088_s15 }
 0x2fc   : > { %741 = vrot.lane.b32.xlu1 %v1320_v37, %s1089_s16  ;;  %738 = vrot.lane.b32.xlu0 %v1323_v38, %s1089_s16 }
 0x300   : > { %749 = vrot.lane.b32.xlu1 %v1323_v38, %s1087_s14  ;;  %747 = vrot.lane.b32.xlu0 %v1320_v37, %s1087_s14 }
 0x35e   : > { %v1040_v45 = vpop.permute.xlu1 %1039  ;;  %v1035_v46 = vpop.permute.xlu0 %1034 }
 0x35f   : > { %v1042_v47 = vunpack.i.h.bf16 %v1040_v45  ;;  %v1041_v48 = vunpack.i.l.bf16 %v1040_v45  ;;  %v1037_v49 = vunpack.i.h.bf16 %v1035_v46  ;;  %v1036_v53 = vunpack.i.l.bf16 %v1035_v46 }
 0x361   : > { %v633_v57 = vsel %vm353_vm3, %v1037_v49, %v1036_v53  ;;  %v645_v58 = vsel %vm362_vm2, %v1042_v47, %v1041_v48  ;;  %v636_v59 = vsel %vm353_vm3, %v1036_v53, %v1037_v49  ;;  %v641_v62 = vsel %vm362_vm2, %v1041_v48, %v1042_v47 }
 0x362   : > { %v1055_v1 = vpop.permute.xlu1 %1054  ;;  %v1045_v2 = vpop.permute.xlu0 %1044  ;;  %v647_v3 = vsel %vm1225_vm9, %v645_v58, %v633_v57  ;;  %v646_v4 = vsel %vm1213_vm4, %v641_v62, %v636_v59 }
 0x363   : > { %v1057_v5 = vunpack.i.h.bf16 %v1055_v1  ;;  %v1056_v6 = vunpack.i.l.bf16 %v1055_v1  ;;  %v1047_v7 = vunpack.i.h.bf16 %v1045_v2  ;;  %v1046_v8 = vunpack.i.l.bf16 %v1045_v2 }
 0x364   : > { %v928_v17 = vpack.c.bf16 %v623_v33, %v647_v3  ;;  %v930_v61 = vpack.c.bf16 %v626_v34, %v646_v4  ;;  %v760_v1 = vcombine.high %v1151_v11, %v1151_v11  ;;  %v761_v2 = vrot.slane %v1151_v11, 6 }
 0x365   : > { %v661_v29 = vsel %vm386_vm8, %v1056_v6, %v1057_v5  ;;  %v665_v60 = vsel %vm386_vm8, %v1057_v5, %v1056_v6  ;;  %v653_v16 = vsel %vm377_vm7, %v1047_v7, %v1046_v8  ;;  %v656_v12 = vsel %vm377_vm7, %v1046_v8, %v1047_v7 }
 0x366   : > { %929 = vmatprep.subr.bf16.mxu1 %v928_v17  ;;  %v1060_v13 = vpop.permute.xlu1 %1059  ;;  %v1050_v14 = vpop.permute.xlu0 %1049  ;;  %v667_v15 = vsel %vm1221_vm6, %v665_v60, %v653_v16  ;;  %v666_v19 = vsel %vm1217_vm5, %v661_v29, %v656_v12  ;;  %v762_v3 = vrot.slane %v760_v1, 6  ;;  %v766_v52 = vsel %vm765_vm13, 0.0, %v761_v2 }
 0x367   : > { %v1062_v21 = vunpack.i.h.bf16 %v1060_v13  ;;  %v1061_v22 = vunpack.i.l.bf16 %v1060_v13  ;;  %v1052_v27 = vunpack.i.h.bf16 %v1050_v14  ;;  %v1051_v28 = vunpack.i.l.bf16 %v1050_v14  ;;  %931 = vmatpush1.bf16.msra.mxu1 %v930_v61 }
 0x368   : > { %v932_v30 = vpack.c.bf16 %v687_v18, %v667_v15  ;;  %v934_v31 = vpack.c.bf16 %v686_v20, %v666_v19  ;;  %v767_v4 = vsel %vm765_vm13, 0.0, %v762_v3  ;;  %v769_v51 = vsel %vm768_vm14, %v766_v52, 0.0 }
 0x369   : > { %v701_v32 = vsel %vm386_vm8, %v1061_v22, %v1062_v21  ;;  %v705_v33 = vsel %vm386_vm8, %v1062_v21, %v1061_v22  ;;  %v693_v34 = vsel %vm377_vm7, %v1052_v27, %v1051_v28  ;;  %v696_v35 = vsel %vm377_vm7, %v1051_v28, %v1052_v27 }
 0x36a   : > { %933 = vmatprep.subr.bf16.mxu1 %v932_v30  ;;  %v1070_v23 = vpop.permute.xlu1 %1069  ;;  %v1065_v24 = vpop.permute.xlu0 %1064  ;;  %v707_v36 = vsel %vm1221_vm6, %v705_v33, %v693_v34  ;;  %v706_v39 = vsel %vm1217_vm5, %v701_v32, %v696_v35  ;;  %v770_v5 = vsel %vm768_vm14, %v767_v4, 0.0 }
 0x36b   : > { %v1072_v40 = vunpack.i.h.bf16 %v1070_v23  ;;  %v1071_v41 = vunpack.i.l.bf16 %v1070_v23  ;;  %v1067_v42 = vunpack.i.h.bf16 %v1065_v24  ;;  %v1066_v43 = vunpack.i.l.bf16 %v1065_v24  ;;  %935 = vmatpush1.bf16.msra.mxu1 %v934_v31 }
 0x36c   : > { %v936_v44 = vpack.c.bf16 %v707_v36, %v1300_v26  ;;  %v938_v45 = vpack.c.bf16 %v706_v39, %v1298_v25 }
 0x36d   : > { %v731_v46 = vsel %vm362_vm2, %v1071_v41, %v1072_v40  ;;  %v735_v47 = vsel %vm362_vm2, %v1072_v40, %v1071_v41  ;;  %v723_v48 = vsel %vm353_vm3, %v1067_v42, %v1066_v43  ;;  %v726_v49 = vsel %vm353_vm3, %v1066_v43, %v1067_v42 }
 0x36e   : > { %937 = vmatprep.subr.bf16.mxu1 %v936_v44  ;;  %v742_v53 = vpop.permute.xlu1 %741  ;;  %v739_v54 = vpop.permute.xlu0 %738  ;;  %v737_v56 = vsel %vm1225_vm9, %v735_v47, %v723_v48  ;;  %v736_v57 = vsel %vm1213_vm4, %v731_v46, %v726_v49 }
 0x36f   : > { %939 = vmatpush1.bf16.msra.mxu1 %v938_v45  ;;  %v940_v25 = vpack.c.bf16 %v1323_v38, %v737_v56  ;;  %v942_v26 = vpack.c.bf16 %v1320_v37, %v736_v57  ;;  %v743_v62 = vsel %vm377_vm7, %v742_v53, %v739_v54  ;;  %v746_v63 = vsel %vm377_vm7, %v739_v54, %v742_v53  ;;  %v758_v37 = vld [vmem:[%s1412_s6] sm:$0xff] }
 0x371   : > { %941 = vmatprep.subr.bf16.mxu1 %v940_v25 }
 0x372   : > { %v750_v58 = vpop.permute.xlu1 %749  ;;  %v748_v59 = vpop.permute.xlu0 %747 }
 0x373   : > { %v751_v0 = vsel %vm386_vm8, %v748_v59, %v750_v58  ;;  %v755_v55 = vsel %vm386_vm8, %v750_v58, %v748_v59  ;;  %943 = vmatpush1.bf16.msra.mxu1 %v942_v26 }
 0x374   : > { %v757_v50 = vsel %vm1221_vm6, %v755_v55, %v743_v62  ;;  %v756_v38 = vsel %vm1217_vm5, %v751_v0, %v746_v63 }
 0x375   : > { %791 = vmatprep.subr.mxu1 %v757_v50 }
 0x377   : > { %792 = vmatpush1.msra.mxu1 %v756_v38 }
 0x378   : > { %915 = vmatmul.mubr.msk.f32.vlgmr.msra.gmra.mrb[0].mxu1 %vm771_vm12, %v758_v37 }
 0x44b   : > { %v841_v6 = vpop.f32.mrb[0].mxu1 }
 0x44c   : > { %v842_v7 = vadd.f32 %v841_v6, %v769_v51  ;;  %v843_v8 = vpop.f32.mrb[1].mxu1 }
 0x44d   : > { %v844_v9 = vadd.f32 %v843_v8, %v770_v5 }
 0x44e   : > { %846 = vst [vmem:[%s278_s30] sm:$0xff] %v842_v7 }
 0x44f   : > { %847 = vst [vmem:[%s278_s30 + $0x8] sm:$0xff] %v844_v9 }
 0x450 PF: > { %s17_s24 = sadd.s32 1, %s1080_s24  }
 0x451   : > { %p14_p4 = scmp.ge.s32.totalorder %s17_s24, 4  }
 0x453   :  { %16 = sbr.rel (!%p14_p4) target bundleno = 1 (0x1), region = 78 }

</bundles_post_ra>
